<compile_context>
chip_gen: v7x
topology: tpu7x:2x2x1
jax: 0.10.0
libtpu: 0.0.40
codegen_flags: <defaults>
</compile_context>

<pallas_src>
import jax
import jax.numpy as jnp
import numpy as np
from jax.experimental import pallas as pl
from jax.experimental.pallas import tpu as pltpu


def _fpn_combine_kernel(nw_ref, x0d_ref, wbd_ref, bd_ref, x1d_ref, x2d_ref,
                        o_ref):
    """Single-step, fully lane-dense combine.

    nw_ref  : SMEM f32[3]        softmax(edge_weights)
    x0d_ref : (4*R8, 8*Cin)      4 MaxPool(2,2) window positions stacked on rows
    wbd_ref : (8*Cin, 8*Cout)    block-diagonal replication of the 1x1 conv weight
    bd_ref  : (1, 8*Cout)        conv bias tiled 8x (per lane-dense pixel group)
    x1d_ref : (R8, 8*Cout)       nearest-upsampled input, lane-dense
    x2d_ref : (R8, 8*Cout)       identity-resampled input, lane-dense
    o_ref   : (R8, 8*Cout)
    """
    r8 = o_ref.shape[0]

    # resample['0']: 1x1 conv at every 2x2 window position, fused into ONE MXU
    # matmul via the block-diagonal weight; elementwise max over the 4 window
    # positions == Conv1x1 -> MaxPool2d(2, 2).
    c = jnp.dot(x0d_ref[...], wbd_ref[...],
                preferred_element_type=jnp.float32)            # (4*R8, 8*Cout)
    node0 = jnp.maximum(jnp.maximum(c[0:r8], c[r8:2 * r8]),
                        jnp.maximum(c[2 * r8:3 * r8], c[3 * r8:4 * r8]))
    # Bias is per output channel and identical across the 4 window positions,
    # so adding it AFTER the max is exact.  (Do not reuse for spatial convs.)
    node0 = node0 + bd_ref[...]

    # weight_method == 'attn': blend with the softmax weights (3 SMEM scalars).
    w0 = nw_ref[0]
    w1 = nw_ref[1]
    w2 = nw_ref[2]
    o_ref[...] = (node0 * w0
                  + x1d_ref[...].astype(jnp.float32) * w1
                  + x2d_ref[...].astype(jnp.float32) * w2).astype(o_ref.dtype)


@jax.jit
def fpn_combine_pallas(x_list, conv_w, conv_b, edge_weights):
    """x_list = [x0, x1, x2] in NCHW (see header). Returns NCHW output."""
    x0, x1, x2 = x_list
    N, Cin, H, W = x0.shape
    Cout = conv_w.shape[1]
    Ho, Wo = H // 2, W // 2
    rows = N * Ho * Wo
    assert H % 2 == 0 and W % 2 == 0 and rows % 8 == 0
    R8 = rows // 8           # lane-dense rows
    LD = 8 * Cout            # lane-dense width (= 128 for Cout = 16)
    f32 = jnp.float32

    # ---- layout glue (plain JAX: transposes / reshapes / broadcast only) ----
    # x0: NCHW -> NHWC -> 4 stacked MaxPool window positions, 8 pixels per row.
    x0_nhwc = jnp.transpose(x0, (0, 2, 3, 1))                    # (N,H,W,Cin)
    x0_dense = (x0_nhwc.reshape(N, Ho, 2, Wo, 2, Cin)
                .transpose(2, 4, 0, 1, 3, 5)                     # (2,2,N,Ho,Wo,Cin)
                .reshape(4 * R8, 8 * Cin))
    # x1: nearest-neighbour 2x upsample folded into the dense reshape chain
    # (broadcast_to, no materialized NCHW intermediate).
    # TODO(synk): move this replication fully in-kernel (e.g. a constant
    # replication matmul on the idle MXU) to avoid the wrapper-side copy.
    H1, W1 = x1.shape[2], x1.shape[3]
    x1_nhwc = jnp.transpose(x1, (0, 2, 3, 1))                    # (N,H1,W1,Cout)
    x1_dense = jnp.broadcast_to(
        x1_nhwc[:, :, None, :, None, :],
        (N, H1, 2, W1, 2, Cout)).reshape(R8, LD)
    # x2: identity resample.
    x2_dense = jnp.transpose(x2, (0, 2, 3, 1)).reshape(R8, LD)

    # block-diagonal weight: the 8 pixels packed per lane-dense row share the
    # same 1x1 conv, so kron(I8, W) does all of them in one MXU pass.
    w_bd = jnp.kron(jnp.eye(8, dtype=f32), conv_w.astype(f32))   # (8Cin, 8Cout)
    b_d = jnp.tile(conv_b.astype(f32).reshape(1, Cout), (1, 8))  # (1, 8Cout)

    # weight_method == 'attn': softmax over the edge weights (3 scalars) in
    # the wrapper, in the input dtype (matches torch.softmax(...type(dtype))).
    nw = jax.nn.softmax(edge_weights.astype(x0.dtype), axis=0).astype(f32)

    out_dense = pl.pallas_call(
        _fpn_combine_kernel,
        out_shape=jax.ShapeDtypeStruct((R8, LD), x0.dtype),
        grid=(1,),
        in_specs=[
            pl.BlockSpec(memory_space=pltpu.MemorySpace.SMEM),      # softmax wts
            pl.BlockSpec((4 * R8, 8 * Cin), lambda i: (0, 0)),      # pool windows
            pl.BlockSpec((8 * Cin, LD), lambda i: (0, 0)),          # block-diag W
            pl.BlockSpec((1, LD), lambda i: (0, 0)),                # tiled bias
            pl.BlockSpec((R8, LD), lambda i: (0, 0)),               # upsampled x1
            pl.BlockSpec((R8, LD), lambda i: (0, 0)),               # x2 (identity)
        ],
        out_specs=pl.BlockSpec((R8, LD), lambda i: (0, 0)),
        compiler_params=pltpu.CompilerParams(
            dimension_semantics=("arbitrary",)),
    )(nw, x0_dense, w_bd, b_d, x1_dense, x2_dense)

    return jnp.transpose(out_dense.reshape(N, Ho, Wo, Cout), (0, 3, 1, 2))


def fpn_combine_ref(x_list, conv_w, conv_b, edge_weights):
    """Pure-JAX reference mirroring the PyTorch forward (NCHW)."""
    x0, x1, x2 = x_list
    conv = jnp.einsum('nchw,cd->ndhw', x0, conv_w,
                      precision=jax.lax.Precision.HIGHEST)
    conv = conv + conv_b[None, :, None, None]
    N, C, H, W = conv.shape
    pooled = conv.reshape(N, C, H // 2, 2, W // 2, 2).max(axis=(3, 5))
    up = jnp.repeat(jnp.repeat(x1, 2, axis=2), 2, axis=3)
    nw = jax.nn.softmax(edge_weights.astype(x0.dtype), axis=0)
    return pooled * nw[0] + up * nw[1] + x2 * nw[2]


if __name__ == "__main__":
    key = jax.random.PRNGKey(0)
    k0, k1, k2, kw, kb, ke = jax.random.split(key, 6)

    N = 2
    fpn_channels = 16
    # offset 0: backbone feat, 8ch @ reduction 8   -> conv(8->16) + maxpool/2
    # offset 1: backbone feat, 16ch @ reduction 32 -> nearest upsample x2
    # offset 2: previous FPN node, 16ch @ reduction 16 -> identity
    x0 = jax.random.normal(k0, (N, 8, 16, 16), jnp.float32)
    x1 = jax.random.normal(k1, (N, 16, 4, 4), jnp.float32)
    x2 = jax.random.normal(k2, (N, 16, 8, 8), jnp.float32)

    # Deterministic synthetic parameters (module __init__ shapes):
    #   ResampleFeatureMap conv: Conv2d(8, 16, 1, bias=True) -> weight (Cin,Cout)
    #   edge_weights: Parameter of shape (len(inputs_offsets),) = (3,)
    conv_w = jax.random.normal(kw, (8, fpn_channels), jnp.float32) * 0.1
    conv_b = jax.random.normal(kb, (fpn_channels,), jnp.float32) * 0.1
    edge_weights = jax.random.normal(ke, (3,), jnp.float32)

    out = fpn_combine_pallas([x0, x1, x2], conv_w, conv_b, edge_weights)
    out = jax.block_until_ready(out)

    ref = fpn_combine_ref([x0, x1, x2], conv_w, conv_b, edge_weights)
    assert out.shape == (N, fpn_channels, 8, 8), out.shape
    np.testing.assert_allclose(np.asarray(out), np.asarray(ref),
                               atol=2e-2, rtol=2e-2)
    print("KERNEL_OK")
</pallas_src>

<mosaic_0001>
module attributes {stable_mosaic.version = 11 : i64} {
  func.func @_fpn_combine_kernel(%arg0: i32, %arg1: memref<3xf32, #tpu.memory_space<smem>>, %arg2: memref<64x64xf32, #tpu.memory_space<vmem>>, %arg3: memref<64x128xf32, #tpu.memory_space<vmem>>, %arg4: memref<1x128xf32, #tpu.memory_space<vmem>>, %arg5: memref<16x128xf32, #tpu.memory_space<vmem>>, %arg6: memref<16x128xf32, #tpu.memory_space<vmem>>, %arg7: memref<16x128xf32, #tpu.memory_space<vmem>>) attributes {dimension_semantics = [#tpu.dimension_semantics<arbitrary>], iteration_bounds = array<i64: 1>, scalar_prefetch = 0 : i64, scratch_operands = 0 : i64, tpu.core_type = #tpu.core_type<tc>, window_params = [{transform_indices = @transform_0, window_bounds = array<i64: 3>}, {pipeline_mode = #tpu.pipeline_mode<synchronous>, transform_indices = @transform_1, window_bounds = array<i64: 64, 64>}, {pipeline_mode = #tpu.pipeline_mode<synchronous>, transform_indices = @transform_2, window_bounds = array<i64: 64, 128>}, {pipeline_mode = #tpu.pipeline_mode<synchronous>, transform_indices = @transform_3, window_bounds = array<i64: 1, 128>}, {pipeline_mode = #tpu.pipeline_mode<synchronous>, transform_indices = @transform_4, window_bounds = array<i64: 16, 128>}, {pipeline_mode = #tpu.pipeline_mode<synchronous>, transform_indices = @transform_5, window_bounds = array<i64: 16, 128>}, {pipeline_mode = #tpu.pipeline_mode<synchronous>, transform_indices = @transform_6, window_bounds = array<i64: 16, 128>}]} {
    %c0 = arith.constant 0 : index
    %c0_0 = arith.constant 0 : index
    %0 = vector.load %arg2[%c0, %c0_0] : memref<64x64xf32, #tpu.memory_space<vmem>>, vector<64x64xf32>
    %c0_1 = arith.constant 0 : index
    %c0_2 = arith.constant 0 : index
    %1 = vector.load %arg3[%c0_1, %c0_2] : memref<64x128xf32, #tpu.memory_space<vmem>>, vector<64x128xf32>
    %cst = arith.constant dense<0.000000e+00> : vector<64x128xf32>
    %2 = tpu.matmul %0, %1, %cst {dimension_numbers = #tpu.dot_dimension_numbers<[1], [0], [0], [1], [0, 0, 1, 1], [], []>} : vector<64x64xf32>, vector<64x128xf32>, vector<64x128xf32> -> vector<64x128xf32>
    %3 = vector.extract_strided_slice %2 {offsets = [0, 0], sizes = [16, 128], strides = [1, 1]} : vector<64x128xf32> to vector<16x128xf32>
    %4 = vector.extract_strided_slice %2 {offsets = [16, 0], sizes = [16, 128], strides = [1, 1]} : vector<64x128xf32> to vector<16x128xf32>
    %5 = arith.maximumf %3, %4 : vector<16x128xf32>
    %6 = vector.extract_strided_slice %2 {offsets = [32, 0], sizes = [16, 128], strides = [1, 1]} : vector<64x128xf32> to vector<16x128xf32>
    %7 = vector.extract_strided_slice %2 {offsets = [48, 0], sizes = [16, 128], strides = [1, 1]} : vector<64x128xf32> to vector<16x128xf32>
    %8 = arith.maximumf %6, %7 : vector<16x128xf32>
    %9 = arith.maximumf %5, %8 : vector<16x128xf32>
    %c0_3 = arith.constant 0 : index
    %c0_4 = arith.constant 0 : index
    %10 = vector.load %arg4[%c0_3, %c0_4] : memref<1x128xf32, #tpu.memory_space<vmem>>, vector<1x128xf32>
    %11 = vector.broadcast %10 : vector<1x128xf32> to vector<16x128xf32>
    %12 = arith.addf %9, %11 : vector<16x128xf32>
    %c0_5 = arith.constant 0 : index
    %13 = memref.load %arg1[%c0_5] : memref<3xf32, #tpu.memory_space<smem>>
    %c1 = arith.constant 1 : index
    %14 = memref.load %arg1[%c1] : memref<3xf32, #tpu.memory_space<smem>>
    %c2 = arith.constant 2 : index
    %15 = memref.load %arg1[%c2] : memref<3xf32, #tpu.memory_space<smem>>
    %16 = vector.broadcast %13 : f32 to vector<16x128xf32>
    %17 = arith.mulf %12, %16 : vector<16x128xf32>
    %c0_6 = arith.constant 0 : index
    %c0_7 = arith.constant 0 : index
    %18 = vector.load %arg5[%c0_6, %c0_7] : memref<16x128xf32, #tpu.memory_space<vmem>>, vector<16x128xf32>
    %19 = vector.broadcast %14 : f32 to vector<16x128xf32>
    %20 = arith.mulf %18, %19 : vector<16x128xf32>
    %21 = arith.addf %17, %20 : vector<16x128xf32>
    %c0_8 = arith.constant 0 : index
    %c0_9 = arith.constant 0 : index
    %22 = vector.load %arg6[%c0_8, %c0_9] : memref<16x128xf32, #tpu.memory_space<vmem>>, vector<16x128xf32>
    %23 = vector.broadcast %15 : f32 to vector<16x128xf32>
    %24 = arith.mulf %22, %23 : vector<16x128xf32>
    %25 = arith.addf %21, %24 : vector<16x128xf32>
    %c0_10 = arith.constant 0 : index
    %c0_11 = arith.constant 0 : index
    %26 = vector.load %arg7[%c0_10, %c0_11] : memref<16x128xf32, #tpu.memory_space<vmem>>, vector<16x128xf32>
    tpu.vector_store %arg7[%c0_10, %c0_11], %25 {strides = array<i32>} : memref<16x128xf32, #tpu.memory_space<vmem>>, vector<16x128xf32>,
    return
  }
  func.func @transform_0(%arg0: i32) -> i32 {
    %c0_i32 = arith.constant 0 : i32
    %c0_i32_0 = arith.constant 0 : i32
    return %c0_i32 : i32
  }
  func.func @transform_1(%arg0: i32) -> (i32, i32) {
    %c0_i32 = arith.constant 0 : i32
    %c0_i32_0 = arith.constant 0 : i32
    %c0_i32_1 = arith.constant 0 : i32
    return %c0_i32, %c0_i32_0 : i32, i32
  }
  func.func @transform_2(%arg0: i32) -> (i32, i32) {
    %c0_i32 = arith.constant 0 : i32
    %c0_i32_0 = arith.constant 0 : i32
    %c0_i32_1 = arith.constant 0 : i32
    return %c0_i32, %c0_i32_0 : i32, i32
  }
  func.func @transform_3(%arg0: i32) -> (i32, i32) {
    %c0_i32 = arith.constant 0 : i32
    %c0_i32_0 = arith.constant 0 : i32
    %c0_i32_1 = arith.constant 0 : i32
    return %c0_i32, %c0_i32_0 : i32, i32
  }
  func.func @transform_4(%arg0: i32) -> (i32, i32) {
    %c0_i32 = arith.constant 0 : i32
    %c0_i32_0 = arith.constant 0 : i32
    %c0_i32_1 = arith.constant 0 : i32
    return %c0_i32, %c0_i32_0 : i32, i32
  }
  func.func @transform_5(%arg0: i32) -> (i32, i32) {
    %c0_i32 = arith.constant 0 : i32
    %c0_i32_0 = arith.constant 0 : i32
    %c0_i32_1 = arith.constant 0 : i32
    return %c0_i32, %c0_i32_0 : i32, i32
  }
  func.func @transform_6(%arg0: i32) -> (i32, i32) {
    %c0_i32 = arith.constant 0 : i32
    %c0_i32_0 = arith.constant 0 : i32
    %c0_i32_1 = arith.constant 0 : i32
    return %c0_i32, %c0_i32_0 : i32, i32
  }
}

</mosaic_0001>

<bundles_post_ra>
// kernel: fpn_combine_pallas.1
= control target key start
LH: loop header
LB: loop body
LE: loop exit
PB: predicated region body
PF: predicated region fallthrough
CT: control target
= control target key end

     0   :  { %11 = vsyncpa [#allocation3], 0  ;;  %s434_s0 = inlined_call_operand.vmem [shape: f32[3], index: 0, kind: input, shape index: {}]   ;;  %s435_s1 = inlined_call_operand.vmem [shape: f32[64,64], index: 1, kind: input, shape index: {}]   ;;  %s436_s2 = inlined_call_operand.vmem [shape: f32[64,128], index: 2, kind: input, shape index: {}]   ;;  %s437_s3 = inlined_call_operand.vmem [shape: f32[1,128], index: 3, kind: input, shape index: {}]   ;;  %s438_s4 = inlined_call_operand.vmem [shape: f32[16,128], index: 4, kind: input, shape index: {}]   ;;  %s439_s5 = inlined_call_operand.vmem [shape: f32[16,128], index: 5, kind: input, shape index: {}]   ;;  %s440_s6 = inlined_call_operand.vmem [shape: f32[16,128], index: 6, kind: output, shape index: {}]  }
   0x1   :  { %s18_s23 = sshll.u32 %s434_s0, 4  ;;  %s19_s23 = int_to_ptr.vmem [resolvable:$true] %s18_s23 }
   0x2   :  { %s304_s24 = scalar_lea.vmem %s19_s23, 16  ;;  %p309_p1 = scmp.lt.s32.totalorder %s19_s23, %s19_s23 }
   0x3   :  { %p305_p0 = scmp.ne.s32.totalorder %s19_s23, %s304_s24  ;;  %p310_p2 = scmp.lt.s32.totalorder %s304_s24, %s304_s24 }
   0x5   :  { %p311_p3 = por %p310_p2, %p309_p1 }
   0x7   :  { %p312_p4 = pnand %p311_p3, %p305_p0 }
   0x9   :  { %315 = shalt.err (!%p312_p4)
}
   0xa   :  { %s318_s25 = smov [#allocation2]  }
   0xb   :  { %21 = dma.vmem_to_smem %s19_s23, 16, %s318_s25, [#allocation3]  }
   0xc   :  { %316 = dma.done.wait [#allocation3], 16  }
   0xd   :  { %317 = vsyncadd [#allocation3], 4294967280 }
   0xe   :  { %35 = sfence }
   0xf   :  { %v44_v0 = vld [vmem:[%s436_s2] sm:$0xff]  ;;  %v45_v1 = vld [vmem:[%s436_s2 + $0x8] sm:$0xff]  ;;  %v46_v2 = vld [vmem:[%s436_s2 + $0x10] sm:$0xff]  ;;  %vm52_vm0 = vcmask 523264   ;;  %s233_s7 = sld [smem:[#allocation2 + $0x1]]  ;;  %s197_s8 = sld [smem:[#allocation2]] }
  0x10   :  { %v279_v3 = vpack.c.bf16 %v45_v1, %v44_v0  ;;  %v47_v4 = vld [vmem:[%s436_s2 + $0x18] sm:$0xff]  ;;  %v48_v6 = vld [vmem:[%s436_s2 + $0x20] sm:$0xff]  ;;  %v49_v7 = vld [vmem:[%s436_s2 + $0x28] sm:$0xff]  ;;  %s234_s9 = sld [smem:[#allocation2 + $0x2]] }
  0x11   :  { %v283_v5 = vpack.c.bf16 %v47_v4, %v46_v2  ;;  %v36_v8 = vld [vmem:[%s435_s1] sm:$0xff]  ;;  %v287_v10 = vpack.c.bf16 %v49_v7, %v48_v6  ;;  %v50_v11 = vld [vmem:[%s436_s2 + $0x30] sm:$0xff]  ;;  %v51_v12 = vld [vmem:[%s436_s2 + $0x38] sm:$0xff] }
  0x12   :  { %280 = vmatprep.subr.bf16.mxu0 %v279_v3  ;;  %295 = vmatprep.subr.bf16.mxu1 %v279_v3  ;;  %v40_v9 = vld [vmem:[%s435_s1 + $0x20] sm:$0xff]  ;;  %v291_v13 = vpack.c.bf16 %v51_v12, %v50_v11  ;;  %v37_v14 = vld [vmem:[%s435_s1 + $0x8] sm:$0xff]  ;;  %v38_v16 = vld [vmem:[%s435_s1 + $0x10] sm:$0xff] }
  0x13   :  { %282 = vmatpush3.bf16.msra.mxu0 %v279_v3  ;;  %299 = vmatpush3.bf16.msra.mxu1 %v279_v3  ;;  %v41_v15 = vld [vmem:[%s435_s1 + $0x28] sm:$0xff]  ;;  %v42_v17 = vld [vmem:[%s435_s1 + $0x30] sm:$0xff]  ;;  %v39_v18 = vld [vmem:[%s435_s1 + $0x18] sm:$0xff] }
  0x14   :  { %284 = vmatprep.subr.bf16.mxu0 %v283_v5  ;;  %296 = vmatprep.subr.bf16.mxu1 %v283_v5  ;;  %v43_v19 = vld [vmem:[%s435_s1 + $0x38] sm:$0xff]  ;;  %v232_v30 = vld [vmem:[%s437_s3] ss:$0 sm:$0xff]  ;;  %v204_v31 = vld [vmem:[%s438_s4 + $0x8] sm:$0xff] }
  0x15   :  { %267 = vmatprep.mubr.msk.f32.mxu0 %vm52_vm0, %v36_v8  ;;  %273 = vmatprep.mubr.msk.f32.mxu1 %vm52_vm0, %v40_v9  ;;  %v205_v32 = vstv %s233_s7  ;;  %v203_v36 = vld [vmem:[%s438_s4] sm:$0xff]  ;;  %v200_v37 = vstv %s197_s8  ;;  %v211_v38 = vld [vmem:[%s439_s5 + $0x8] sm:$0xff] }
  0x16   :  { %v212_v39 = vstv %s234_s9  ;;  %v207_v42 = vmul.f32 %v205_v32, %v204_v31  ;;  %v210_v43 = vld [vmem:[%s439_s5] sm:$0xff]  ;;  %v206_v45 = vmul.f32 %v205_v32, %v203_v36 }
  0x17   :  { %286 = vmatpush3.bf16.msra.mxu0 %v283_v5  ;;  %300 = vmatpush3.bf16.msra.mxu1 %v283_v5  ;;  %v214_v47 = vmul.f32 %v212_v39, %v211_v38  ;;  %v213_v49 = vmul.f32 %v212_v39, %v210_v43 }
  0x18   :  { %288 = vmatprep.subr.bf16.mxu0 %v287_v10  ;;  %297 = vmatprep.subr.bf16.mxu1 %v287_v10 }
  0x1b   :  { %290 = vmatpush3.bf16.msra.mxu0 %v287_v10  ;;  %301 = vmatpush3.bf16.msra.mxu1 %v287_v10 }
  0x1c   :  { %292 = vmatprep.subr.bf16.mxu0 %v291_v13  ;;  %298 = vmatprep.subr.bf16.mxu1 %v291_v13 }
  0x1f   :  { %294 = vmatpush3.bf16.msra.mxu0 %v291_v13  ;;  %302 = vmatpush3.bf16.msra.mxu1 %v291_v13 }
  0x22   :  { %268 = vmatmul.mubr.msk.f32.vlgmr.msra.gmra.mrb[0].mxu0 %vm52_vm0, %v37_v14  ;;  %274 = vmatmul.mubr.msk.f32.vlgmr.msra.gmra.mrb[0].mxu1 %vm52_vm0, %v41_v15 }
  0x23   :  { %270 = vmatprep.mubr.msk.f32.mxu0 %vm52_vm0, %v38_v16  ;;  %276 = vmatprep.mubr.msk.f32.mxu1 %vm52_vm0, %v42_v17 }
  0x26   :  { %271 = vmatmul.mubr.msk.f32.gmra.mrb[2].mxu0 %vm52_vm0, %v39_v18  ;;  %277 = vmatmul.mubr.msk.f32.gmra.mrb[2].mxu1 %vm52_vm0, %v43_v19 }
  0xf5   :  { %v269_v20 = vpop.f32.mrb[0].mxu0  ;;  %v275_v21 = vpop.f32.mrb[0].mxu1 }
  0xf6   :  { %v143_v22 = vpop.f32.mrb[1].mxu0  ;;  %v163_v23 = vpop.f32.mrb[1].mxu1 }
  0xf9   :  { %v272_v24 = vpop.f32.mrb[2].mxu0  ;;  %v278_v25 = vpop.f32.mrb[2].mxu1 }
  0xfa   :  { %v183_v26 = vmax.f32 %v269_v20, %v272_v24  ;;  %v185_v27 = vmax.f32 %v275_v21, %v278_v25  ;;  %v153_v28 = vpop.f32.mrb[3].mxu0  ;;  %v173_v29 = vpop.f32.mrb[3].mxu1 }
  0xfb   :  { %v182_v33 = vmax.f32 %v143_v22, %v153_v28  ;;  %v184_v34 = vmax.f32 %v163_v23, %v173_v29 }
  0xfc   :  { %v187_v35 = vmax.f32 %v183_v26, %v185_v27 }
  0xfd   :  { %v186_v40 = vmax.f32 %v182_v33, %v184_v34 }
  0xfe   :  { %v196_v41 = vadd.f32 %v232_v30, %v187_v35 }
  0xff   :  { %v195_v44 = vadd.f32 %v232_v30, %v186_v40 }
 0x100   :  { %v202_v46 = vmul.f32 %v200_v37, %v196_v41 }
 0x101   :  { %v201_v48 = vmul.f32 %v200_v37, %v195_v44 }
 0x102   :  { %v209_v50 = vadd.f32 %v207_v42, %v202_v46 }
 0x103   :  { %v208_v51 = vadd.f32 %v206_v45, %v201_v48 }
 0x104   :  { %v216_v52 = vadd.f32 %v214_v47, %v209_v50 }
 0x105   :  { %v215_v53 = vadd.f32 %v213_v49, %v208_v51 }
 0x106   :  { %218 = vst [vmem:[%s440_s6 + $0x8] sm:$0xff] %v216_v52 }
 0x107   :  { %217 = vst [vmem:[%s440_s6] sm:$0xff] %v215_v53 }
 0x108   :  { %223 = vsyncpa [#allocation3], 1 }

</bundles_post_ra>
